<compile_context>
chip_gen: v5e
topology: v5e:2x2
jax: 0.10.0
libtpu: 0.0.40
codegen_flags: <defaults>
</compile_context>

<pallas_src>
import functools

import jax
import jax.numpy as jnp
from jax.experimental import pallas as pl
from jax.experimental.pallas import tpu as pltpu


def _round_up(v, m):
    return ((v + m - 1) // m) * m


def _gnn_kernel_1d(x_ref, w_ref, adj_ref, o_ref):
    # One destination-row tile per step; adj row-block streams, x_aug / W_aug
    # are resident.  out = (adj @ [x, 1]) @ [[W^T], [b]].
    h = jnp.dot(adj_ref[...], x_ref[...], preferred_element_type=jnp.float32)
    o_ref[...] = jnp.dot(h, w_ref[...],
                         preferred_element_type=jnp.float32).astype(o_ref.dtype)


def _gnn_kernel_2d(x_ref, w_ref, adj_ref, o_ref, acc_ref):
    k = pl.program_id(1)

    @pl.when(k == 0)
    def _():
        acc_ref[...] = jnp.zeros_like(acc_ref)

    # Accumulate (adj @ x_aug) over source-node tiles (contraction over tk).
    acc_ref[...] += jnp.dot(adj_ref[...], x_ref[...],
                            preferred_element_type=jnp.float32)

    @pl.when(k == pl.num_programs(1) - 1)
    def _():
        o_ref[...] = jnp.dot(acc_ref[...], w_ref[...],
                             preferred_element_type=jnp.float32).astype(o_ref.dtype)


def _vmem_limit(est_bytes):
    # Explicit scoped-VMEM limit: above the v5e 16 MiB default, below v7x's
    # 64 MiB physical capacity.
    return int(min(max(2 * est_bytes, 32 << 20), 48 << 20))


@functools.partial(jax.jit,
                   static_argnames=("tm", "tk", "force_2d", "use_bf16_adj"))
def gnn_layer(x, weight, bias, adj, *, tm=512, tk=512, force_2d=False,
              use_bf16_adj=False):
    """x: [N, F_in] f32, weight: [F_out, F_in] (PyTorch Linear layout),
    bias: [F_out], adj: [N, N] f32 (dense). Returns [N, F_out] f32."""
    n, f_in = x.shape
    f_out = weight.shape[0]
    f_aug = f_in + 1
    f_pad = max(128, _round_up(f_out, 128))
    out_dtype = x.dtype

    # Homogeneous coordinates: fold bias into the weight matrix.
    x_aug = jnp.concatenate([x, jnp.ones((n, 1), x.dtype)], axis=1)
    w_aug = jnp.concatenate(
        [weight.T.astype(jnp.float32), bias.reshape(1, f_out).astype(jnp.float32)],
        axis=0)
    if f_pad != f_out:
        w_aug = jnp.pad(w_aug, ((0, 0), (0, f_pad - f_out)))

    # Row-tile size: keep the "parallel" destination-row axis >= 4 tiles when
    # possible so v7x megacore can split it evenly across both TensorCores.
    tm_eff = tm
    while tm_eff > 128 and pl.cdiv(n, tm_eff) < 4:
        tm_eff //= 2
    n_rows = _round_up(n, tm_eff)

    # Static VMEM estimate for the 1-D path (double-buffered, lane-padded).
    lanes = 128
    est_1d = (2 * tm_eff * n * 4                       # adj row-block
              + 2 * n * lanes * 4                      # resident x_aug
              + 2 * _round_up(f_aug, 8) * f_pad * 4    # resident W_aug
              + 2 * tm_eff * f_pad * 4)                # output tile
    use_1d = (not force_2d) and est_1d <= (20 << 20)

    if use_1d:
        adj_p = adj if n_rows == n else jnp.pad(adj, ((0, n_rows - n), (0, 0)))
        x_p = x_aug
        if use_bf16_adj:
            adj_p = adj_p.astype(jnp.bfloat16)
            x_p = x_p.astype(jnp.bfloat16)

        out_padded = pl.pallas_call(
            _gnn_kernel_1d,
            out_shape=jax.ShapeDtypeStruct((n_rows, f_pad), out_dtype),
            grid_spec=pltpu.PrefetchScalarGridSpec(
                num_scalar_prefetch=0,
                grid=(n_rows // tm_eff,),
                in_specs=[
                    pl.BlockSpec((n, f_aug), lambda i: (0, 0)),      # x_aug (resident)
                    pl.BlockSpec((f_aug, f_pad), lambda i: (0, 0)),  # W_aug (resident)
                    pl.BlockSpec((tm_eff, n), lambda i: (i, 0)),     # adj row-block
                ],
                out_specs=pl.BlockSpec((tm_eff, f_pad), lambda i: (i, 0)),
            ),
            compiler_params=pltpu.CompilerParams(
                dimension_semantics=("parallel",),
                vmem_limit_bytes=_vmem_limit(est_1d)),
        )(x_p, w_aug, adj_p)
    else:
        tk_eff = min(tk, max(128, _round_up(n, 128)))
        n_cols = _round_up(n, tk_eff)

        adj_p = adj
        if n_rows != n or n_cols != n:
            adj_p = jnp.pad(adj, ((0, n_rows - n), (0, n_cols - n)))
        x_p = x_aug if n_cols == n else jnp.pad(x_aug, ((0, n_cols - n), (0, 0)))
        if use_bf16_adj:
            adj_p = adj_p.astype(jnp.bfloat16)
            x_p = x_p.astype(jnp.bfloat16)

        est_2d = (2 * tm_eff * tk_eff * 4                  # adj tile
                  + 2 * tk_eff * lanes * 4                 # x_aug tile
                  + 2 * _round_up(f_aug, 8) * f_pad * 4    # resident W_aug
                  + 2 * tm_eff * f_pad * 4                 # output tile
                  + tm_eff * lanes * 4)                    # accumulator scratch

        out_padded = pl.pallas_call(
            _gnn_kernel_2d,
            out_shape=jax.ShapeDtypeStruct((n_rows, f_pad), out_dtype),
            grid_spec=pltpu.PrefetchScalarGridSpec(
                num_scalar_prefetch=0,
                grid=(n_rows // tm_eff, n_cols // tk_eff),
                in_specs=[
                    pl.BlockSpec((tk_eff, f_aug), lambda i, k: (k, 0)),   # x_aug tile
                    pl.BlockSpec((f_aug, f_pad), lambda i, k: (0, 0)),    # W_aug (resident)
                    pl.BlockSpec((tm_eff, tk_eff), lambda i, k: (i, k)),  # adj tile
                ],
                out_specs=pl.BlockSpec((tm_eff, f_pad), lambda i, k: (i, 0)),
                scratch_shapes=[pltpu.VMEM((tm_eff, f_aug), jnp.float32)],
            ),
            compiler_params=pltpu.CompilerParams(
                dimension_semantics=("parallel", "arbitrary"),
                vmem_limit_bytes=_vmem_limit(est_2d)),
        )(x_p, w_aug, adj_p)

    out = out_padded
    if n_rows != n:
        out = out[:n]
    if f_pad != f_out:
        out = out[:, :f_out]
    return out


def gnn_layer_ref(x, weight, bias, adj):
    return adj @ (x @ weight.T + bias)


if __name__ == "__main__":
    key = jax.random.PRNGKey(0)
    k_x, k_w, k_b, k_adj = jax.random.split(key, 4)

    N, F_IN, F_OUT = 512, 32, 64

    x = jax.random.normal(k_x, (N, F_IN), dtype=jnp.float32)

    # Deterministic "PyTorch-like" Linear init: U(-1/sqrt(F_IN), 1/sqrt(F_IN)).
    bound = 1.0 / (F_IN ** 0.5)
    weight = jax.random.uniform(k_w, (F_OUT, F_IN), dtype=jnp.float32,
                                minval=-bound, maxval=bound)
    bias = jax.random.uniform(k_b, (F_OUT,), dtype=jnp.float32,
                              minval=-bound, maxval=bound)

    # Random sparse-ish adjacency (dense representation), row-normalized.
    mask = (jax.random.uniform(k_adj, (N, N)) < 0.1).astype(jnp.float32)
    mask = mask + jnp.eye(N, dtype=jnp.float32)          # self loops
    deg = jnp.maximum(mask.sum(axis=1, keepdims=True), 1.0)
    adj = mask / deg

    ref = gnn_layer_ref(x, weight, bias, adj)

    # 1-D (fused row-block) path — the one selected at this problem size.
    out = gnn_layer(x, weight, bias, adj)
    jax.block_until_ready(out)
    assert out.shape == (N, F_OUT)
    assert jnp.allclose(out, ref, atol=1e-4, rtol=1e-4), (
        float(jnp.max(jnp.abs(out - ref))))

    # Also exercise the 2-D accumulating path (used for large N).
    out2 = gnn_layer(x, weight, bias, adj, tm=128, tk=128, force_2d=True)
    jax.block_until_ready(out2)
    assert out2.shape == (N, F_OUT)
    assert jnp.allclose(out2, ref, atol=1e-4, rtol=1e-4), (
        float(jnp.max(jnp.abs(out2 - ref))))

    print("KERNEL_OK")
</pallas_src>

<mosaic_0001>
module attributes {stable_mosaic.version = 11 : i64} {
  func.func @_gnn_kernel_1d(%arg0: i32, %arg1: memref<512x33xf32, #tpu.memory_space<vmem>>, %arg2: memref<33x128xf32, #tpu.memory_space<vmem>>, %arg3: memref<128x512xf32, #tpu.memory_space<vmem>>, %arg4: memref<128x128xf32, #tpu.memory_space<vmem>>) attributes {dimension_semantics = [#tpu.dimension_semantics<parallel>], iteration_bounds = array<i64: 4>, scalar_prefetch = 0 : i64, scratch_operands = 0 : i64, tpu.core_type = #tpu.core_type<tc>, window_params = [{pipeline_mode = #tpu.pipeline_mode<synchronous>, transform_indices = @transform_0, window_bounds = array<i64: 512, 33>}, {pipeline_mode = #tpu.pipeline_mode<synchronous>, transform_indices = @transform_1, window_bounds = array<i64: 33, 128>}, {transform_indices = @transform_2, window_bounds = array<i64: 128, 512>}, {transform_indices = @transform_3, window_bounds = array<i64: 128, 128>}]} {
    %c0 = arith.constant 0 : index
    %c0_0 = arith.constant 0 : index
    %0 = vector.load %arg3[%c0, %c0_0] : memref<128x512xf32, #tpu.memory_space<vmem>>, vector<128x512xf32>
    %c0_1 = arith.constant 0 : index
    %c0_2 = arith.constant 0 : index
    %1 = vector.load %arg1[%c0_1, %c0_2] : memref<512x33xf32, #tpu.memory_space<vmem>>, vector<512x33xf32>
    %cst = arith.constant dense<0.000000e+00> : vector<128x33xf32>
    %2 = tpu.matmul %0, %1, %cst {dimension_numbers = #tpu.dot_dimension_numbers<[1], [0], [0], [1], [0, 0, 1, 1], [], []>} : vector<128x512xf32>, vector<512x33xf32>, vector<128x33xf32> -> vector<128x33xf32>
    %c0_3 = arith.constant 0 : index
    %c0_4 = arith.constant 0 : index
    %3 = vector.load %arg2[%c0_3, %c0_4] : memref<33x128xf32, #tpu.memory_space<vmem>>, vector<33x128xf32>
    %cst_5 = arith.constant dense<0.000000e+00> : vector<128x128xf32>
    %4 = tpu.matmul %2, %3, %cst_5 {dimension_numbers = #tpu.dot_dimension_numbers<[1], [0], [0], [1], [0, 0, 1, 1], [], []>} : vector<128x33xf32>, vector<33x128xf32>, vector<128x128xf32> -> vector<128x128xf32>
    %c0_6 = arith.constant 0 : index
    %c0_7 = arith.constant 0 : index
    %5 = vector.load %arg4[%c0_6, %c0_7] : memref<128x128xf32, #tpu.memory_space<vmem>>, vector<128x128xf32>
    tpu.vector_store %arg4[%c0_6, %c0_7], %4 {strides = array<i32>} : memref<128x128xf32, #tpu.memory_space<vmem>>, vector<128x128xf32>,
    return
  }
  func.func @transform_0(%arg0: i32) -> (i32, i32) {
    %c0_i32 = arith.constant 0 : i32
    %c0_i32_0 = arith.constant 0 : i32
    %c0_i32_1 = arith.constant 0 : i32
    return %c0_i32, %c0_i32_0 : i32, i32
  }
  func.func @transform_1(%arg0: i32) -> (i32, i32) {
    %c0_i32 = arith.constant 0 : i32
    %c0_i32_0 = arith.constant 0 : i32
    %c0_i32_1 = arith.constant 0 : i32
    return %c0_i32, %c0_i32_0 : i32, i32
  }
  func.func @transform_2(%arg0: i32) -> (i32, i32) {
    %c0_i32 = arith.constant 0 : i32
    %c0_i32_0 = arith.constant 0 : i32
    return %arg0, %c0_i32 : i32, i32
  }
  func.func @transform_3(%arg0: i32) -> (i32, i32) {
    %c0_i32 = arith.constant 0 : i32
    %c0_i32_0 = arith.constant 0 : i32
    return %arg0, %c0_i32 : i32, i32
  }
}

</mosaic_0001>

<bundles_post_ra>
// kernel: gnn_layer.1
= control target key start
LH: loop header
LB: loop body
LE: loop exit
PB: predicated region body
PF: predicated region fallthrough
CT: control target
= control target key end

     0   :  { %8 = vsyncpa [#allocation3], 0  ;;  %s1434_s0 = inlined_call_operand.vmem [shape: f32[512,33], index: 0, kind: input, shape index: {}]   ;;  %s1435_s1 = inlined_call_operand.vmem [shape: f32[33,128], index: 1, kind: input, shape index: {}]   ;;  %s1436_s2 = inlined_call_operand.hbm [shape: f32[512,512], index: 2, kind: input, shape index: {}]   ;;  %s1437_s3 = inlined_call_operand.vmem [shape: f32[512,128], index: 3, kind: output, shape index: {}]  }
   0x1   :  { %10 = vsyncpa [#allocation3 + $0x1], 0  ;;  %s1000_s12 = smov 0   ;;  %s1002_s13 = smov 0  }
   0x2   :  { %s1004_s14 = smov 0   ;;  %s1006_s15 = smov 0  }
   0x3 LB: > { %s790_s16 = sadd.s32 4294967295, %s976_s15   ;;  %s1020_s17 = sadd.s32 1, %s976_s15   ;;  %s976_s15 = sphi %s1006_s15, %s1444_s15   ;;  %s972_s14 = sphi %s1004_s14, %s1443_s14   ;;  %s968_s13 = sphi %s1002_s13, %s1442_s13   ;;  %s964_s12 = sphi %s1000_s12, %s1441_s12  }
   0x4   : > { %s62_s18 = ssub.s32 %s976_s15, %s1020_s17  ;;  %s65_s19 = sadd.s32 1, %s972_s14 }
   0x5   : > { %p63_p0 = scmp.eq.s32.totalorder %s62_s18, 0  ;;  %p72_p1 = scmp.ne.s32.totalorder %s972_s14, %s968_s13 }
   0x6   : > { %p73_p2 = scmp.eq.s32.totalorder %s976_s15, 0  ;;  %p78_p3 = scmp.ne.s32.totalorder %s968_s13, %s964_s12 }
   0x7   : > { %s1030_s20 = scalar_select %p63_p0, %s972_s14, %s65_s19  }
   0x8   : > { %p1032_p4 = por %p73_p2, %p72_p1  ;;  %p79_p5 = scmp.eq.s32.totalorder %s790_s16, 0 }
   0x9   : > { %p877_p6 = scmp.lt.s32.totalorder %s976_s15, 4  ;;  %s134_s23 = sand.u32 1, %s972_s14  }
   0xa   : > { %p1039_p7 = por %p79_p5, %p78_p3  ;;  %s794_s24 = sshll.u32 %s134_s23, 9 }
   0xb   : > { %s822_s25 = sshll.u32 %s976_s15, 9  ;;  %s138_s29 = scalar_lea.vmem [#allocation2], %s794_s24 }
   0xc   : > { %s144_s28 = scalar_lea.hbm %s1436_s2, %s822_s25  ;;  %s147_s30 = sshll.u32 %s138_s29, 4  ;;  %s148_s30 = int_to_ptr.vmem [resolvable:$true] %s147_s30 }
   0xd   : > { %s145_s4 = sshll.u32 %s144_s28, 4  ;;  %p1050_p8 = pnand %p877_p6, %p1032_p4  ;;  %s146_s4 = int_to_ptr.hbm [resolvable:$true] %s145_s4 }
   0xe   : > { %p798_p9 = scmp.ge.s32.totalorder %s976_s15, 1  ;;  %s135_s6 = scalar_lea.sflag [#allocation3], %s134_s23 }
   0xf   : > { %s912_s7 = sshra.s32 %s146_s4, 4  ;;  %p916_p11 = pneg %p1050_p8  ;;  %s913_s7 = int_to_ptr.hbm [resolvable:$true] %s912_s7 }
  0x10   : > { %s914_s8 = scalar_lea.hbm %s913_s7, 512  ;;  %s919_s11 = scalar_lea.hbm %s1436_s2, 2048 }
  0x11   : > { %p915_p10 = scmp.ne.s32.totalorder %s913_s7, %s914_s8  ;;  %p920_p0 = scmp.lt.s32.totalorder %s913_s7, %s1436_s2 }
  0x12   : > { %p921_p1 = scmp.lt.s32.totalorder %s919_s11, %s914_s8 }
  0x13   : > { %p917_p12 = pnand %p916_p11, %p915_p10 }
  0x14   : > { %p922_p2 = por %p921_p1, %p920_p0 }
  0x15   : > { %p918_p13 = pneg %p917_p12 }
  0x17   : > { %p923_p3 = pnand %p922_p2, %p918_p13 }
  0x19   : > { %926 = shalt.err (!%p923_p3)
}
  0x1a   : > { %s978_s19 = smov 512   ;;  %s979_s21 = smov 32  }
  0x1b   : > { %876 = dma.hbm_to_vmem [thread:$0]  (!%p1050_p8), %s146_s4, 8192, %s148_s30, %s135_s6, %s978_s19, %s978_s19, %s979_s21  }
  0x1c   : > { %p155_p4 = scmp.lt.s32.totalorder %s976_s15, 5 }
  0x1e   : > { %p156_p5 = pnand %p798_p9, %p155_p4 }
  0x1f   : > { %s161_s23 = sand.u32 (!%p156_p5), 1, %s968_s13  }
  0x20   : > { %159 = sbr.rel (%p156_p5) target bundleno = 487 (0x1e7), region = 32  ;;  %s799_s24 = sshll.u32 (!%p156_p5), %s161_s23, 9 }
  0x21   : > { %s162_s25 = scalar_lea.sflag (!%p156_p5), [#allocation3], %s161_s23  ;;  %s1069_s26 = scalar_lea.vmem (!%p156_p5), [#allocation2], %s799_s24 }
  0x25   : > { %959 = dma.done.wait (%p1039_p7), %s162_s25, 8192  }
  0x26   : > { %961 = vsyncadd (%p1039_p7), %s162_s25, 4294959104  ;;  %v275_v0 = vld [vmem:[%s1434_s0 + $0x78] sm:$0xff]  ;;  %v274_v1 = vld [vmem:[%s1434_s0 + $0x70] sm:$0xff]  ;;  %vm638_vm0 = vcmask 1040384   ;;  %vm589_vm1 = vcmask 269312  }
  0x27   : > { %823 = vmatpush.msra.mxu1 %v275_v0  ;;  %824 = vmatpush.msra.mxu2 %v275_v0  ;;  %v273_v2 = vld [vmem:[%s1434_s0 + $0x68] sm:$0xff]  ;;  %v272_v3 = vld [vmem:[%s1434_s0 + $0x60] sm:$0xff]  ;;  %v271_v4 = vld [vmem:[%s1434_s0 + $0x58] sm:$0xff] }
  0x28   : > { %825 = vmatpush.msra.mxu3 %v275_v0  ;;  %324 = vmatpush.msra.mxu0 %v275_v0  ;;  %v270_v5 = vld [vmem:[%s1434_s0 + $0x50] sm:$0xff]  ;;  %v269_v6 = vld [vmem:[%s1434_s0 + $0x48] sm:$0xff]  ;;  %v268_v7 = vld [vmem:[%s1434_s0 + $0x40] sm:$0xff] }
  0x29   : > { %826 = vmatpush.msra.mxu1 %v274_v1  ;;  %827 = vmatpush.msra.mxu2 %v274_v1  ;;  %v267_v8 = vld [vmem:[%s1434_s0 + $0x38] sm:$0xff]  ;;  %v266_v9 = vld [vmem:[%s1434_s0 + $0x30] sm:$0xff]  ;;  %v265_v10 = vld [vmem:[%s1434_s0 + $0x28] sm:$0xff] }
  0x2a   : > { %828 = vmatpush.msra.mxu3 %v274_v1  ;;  %325 = vmatpush.msra.mxu0 %v274_v1  ;;  %v264_v11 = vld [vmem:[%s1434_s0 + $0x20] sm:$0xff]  ;;  %v263_v12 = vld [vmem:[%s1434_s0 + $0x18] sm:$0xff]  ;;  %v262_v13 = vld [vmem:[%s1434_s0 + $0x10] sm:$0xff] }
  0x2b   : > { %829 = vmatpush.msra.mxu1 %v273_v2  ;;  %830 = vmatpush.msra.mxu2 %v273_v2  ;;  %v261_v14 = vld [vmem:[%s1434_s0 + $0x8] sm:$0xff]  ;;  %v260_v15 = vld [vmem:[%s1434_s0] sm:$0xff]  ;;  %v307_v18 = vld [vmem:[%s1434_s0 + $0x178] sm:$0xff] }
  0x2c   : > { %831 = vmatpush.msra.mxu3 %v273_v2  ;;  %326 = vmatpush.msra.mxu0 %v273_v2  ;;  %v212_v16 = vld [vmem:[%s1069_s26 + $0x80] sm:$0xff]  ;;  %v291_v19 = vld [vmem:[%s1434_s0 + $0xf8] sm:$0xff]  ;;  %v306_v21 = vld [vmem:[%s1434_s0 + $0x170] sm:$0xff] }
  0x2d   : > { %832 = vmatpush.msra.mxu1 %v272_v3  ;;  %833 = vmatpush.msra.mxu2 %v272_v3  ;;  %v228_v17 = vld [vmem:[%s1069_s26 + $0x100] sm:$0xff]  ;;  %v323_v22 = vld [vmem:[%s1434_s0 + $0x1f8] sm:$0xff]  ;;  %v290_v23 = vld [vmem:[%s1434_s0 + $0xf0] sm:$0xff] }
  0x2e   : > { %834 = vmatpush.msra.mxu3 %v272_v3  ;;  %327 = vmatpush.msra.mxu0 %v272_v3  ;;  %v244_v20 = vld [vmem:[%s1069_s26 + $0x180] sm:$0xff]  ;;  %v305_v24 = vld [vmem:[%s1434_s0 + $0x168] sm:$0xff]  ;;  %v322_v25 = vld [vmem:[%s1434_s0 + $0x1f0] sm:$0xff] }
  0x2f   : > { %835 = vmatpush.msra.mxu1 %v271_v4  ;;  %836 = vmatpush.msra.mxu2 %v271_v4  ;;  %v289_v26 = vld [vmem:[%s1434_s0 + $0xe8] sm:$0xff]  ;;  %v304_v27 = vld [vmem:[%s1434_s0 + $0x160] sm:$0xff]  ;;  %v303_v33 = vld [vmem:[%s1434_s0 + $0x158] sm:$0xff] }
  0x30   : > { %837 = vmatpush.msra.mxu3 %v271_v4  ;;  %328 = vmatpush.msra.mxu0 %v271_v4  ;;  %v321_v28 = vld [vmem:[%s1434_s0 + $0x1e8] sm:$0xff]  ;;  %v196_v29 = vld [vmem:[%s1069_s26] sm:$0xff]  ;;  %v287_v35 = vld [vmem:[%s1434_s0 + $0xd8] sm:$0xff] }
  0x31   : > { %838 = vmatpush.msra.mxu1 %v270_v5  ;;  %839 = vmatpush.msra.mxu2 %v270_v5  ;;  %v288_v30 = vld [vmem:[%s1434_s0 + $0xe0] sm:$0xff]  ;;  %v302_v37 = vld [vmem:[%s1434_s0 + $0x150] sm:$0xff]  ;;  %v319_v38 = vld [vmem:[%s1434_s0 + $0x1d8] sm:$0xff] }
  0x32   : > { %840 = vmatpush.msra.mxu3 %v270_v5  ;;  %329 = vmatpush.msra.mxu0 %v270_v5  ;;  %v232_v31 = vld [vmem:[%s1069_s26 + $0x120] sm:$0xff]  ;;  %v286_v39 = vld [vmem:[%s1434_s0 + $0xd0] sm:$0xff]  ;;  %v301_v40 = vld [vmem:[%s1434_s0 + $0x148] sm:$0xff] }
  0x33   : > { %841 = vmatpush.msra.mxu1 %v269_v6  ;;  %842 = vmatpush.msra.mxu2 %v269_v6  ;;  %v216_v32 = vld [vmem:[%s1069_s26 + $0xa0] sm:$0xff]  ;;  %v318_v41 = vld [vmem:[%s1434_s0 + $0x1d0] sm:$0xff]  ;;  %v285_v42 = vld [vmem:[%s1434_s0 + $0xc8] sm:$0xff] }
  0x34   : > { %843 = vmatpush.msra.mxu3 %v269_v6  ;;  %330 = vmatpush.msra.mxu0 %v269_v6  ;;  %v320_v34 = vld [vmem:[%s1434_s0 + $0x1e0] sm:$0xff]  ;;  %v317_v45 = vld [vmem:[%s1434_s0 + $0x1c8] sm:$0xff]  ;;  %v299_v49 = vld [vmem:[%s1434_s0 + $0x138] sm:$0xff] }
  0x35   : > { %844 = vmatpush.msra.mxu1 %v268_v7  ;;  %845 = vmatpush.msra.mxu2 %v268_v7  ;;  %v248_v36 = vld [vmem:[%s1069_s26 + $0x1a0] sm:$0xff]  ;;  %v283_v51 = vld [vmem:[%s1434_s0 + $0xb8] sm:$0xff]  ;;  %v298_v53 = vld [vmem:[%s1434_s0 + $0x130] sm:$0xff] }
  0x36   : > { %846 = vmatpush.msra.mxu3 %v268_v7  ;;  %331 = vmatpush.msra.mxu0 %v268_v7  ;;  %v300_v43 = vld [vmem:[%s1434_s0 + $0x140] sm:$0xff]  ;;  %v315_v54 = vld [vmem:[%s1434_s0 + $0x1b8] sm:$0xff]  ;;  %v282_v55 = vld [vmem:[%s1434_s0 + $0xb0] sm:$0xff] }
  0x37   : > { %847 = vmatpush.msra.mxu1 %v267_v8  ;;  %848 = vmatpush.msra.mxu2 %v267_v8  ;;  %v200_v44 = vld [vmem:[%s1069_s26 + $0x20] sm:$0xff]  ;;  %v297_v56 = vld [vmem:[%s1434_s0 + $0x128] sm:$0xff]  ;;  %v314_v57 = vld [vmem:[%s1434_s0 + $0x1b0] sm:$0xff] }
  0x38   : > { %849 = vmatpush.msra.mxu3 %v267_v8  ;;  %332 = vmatpush.msra.mxu0 %v267_v8  ;;  %v284_v46 = vld [vmem:[%s1434_s0 + $0xc0] sm:$0xff]  ;;  %v281_v58 = vld [vmem:[%s1434_s0 + $0xa8] sm:$0xff]  ;;  %v295_v1 = vld [vmem:[%s1434_s0 + $0x118] sm:$0xff] }
  0x39   : > { %850 = vmatpush.msra.mxu1 %v266_v9  ;;  %851 = vmatpush.msra.mxu2 %v266_v9  ;;  %v220_v47 = vld [vmem:[%s1069_s26 + $0xc0] sm:$0xff]  ;;  %v313_v61 = vld [vmem:[%s1434_s0 + $0x1a8] sm:$0xff]  ;;  %v279_v3 = vld [vmem:[%s1434_s0 + $0x98] sm:$0xff] }
  0x3a   : > { %852 = vmatpush.msra.mxu3 %v266_v9  ;;  %333 = vmatpush.msra.mxu0 %v266_v9  ;;  %v236_v48 = vld [vmem:[%s1069_s26 + $0x140] sm:$0xff]  ;;  %v294_v5 = vld [vmem:[%s1434_s0 + $0x110] sm:$0xff]  ;;  %v311_v6 = vld [vmem:[%s1434_s0 + $0x198] sm:$0xff] }
  0x3b   : > { %853 = vmatpush.msra.mxu1 %v265_v10  ;;  %854 = vmatpush.msra.mxu2 %v265_v10  ;;  %v316_v50 = vld [vmem:[%s1434_s0 + $0x1c0] sm:$0xff]  ;;  %v278_v7 = vld [vmem:[%s1434_s0 + $0x90] sm:$0xff]  ;;  %v293_v8 = vld [vmem:[%s1434_s0 + $0x108] sm:$0xff] }
  0x3c   : > { %855 = vmatpush.msra.mxu3 %v265_v10  ;;  %334 = vmatpush.msra.mxu0 %v265_v10  ;;  %v252_v52 = vld [vmem:[%s1069_s26 + $0x1c0] sm:$0xff]  ;;  %v310_v9 = vld [vmem:[%s1434_s0 + $0x190] sm:$0xff]  ;;  %v277_v10 = vld [vmem:[%s1434_s0 + $0x88] sm:$0xff] }
  0x3d   : > { %856 = vmatpush.msra.mxu1 %v264_v11  ;;  %857 = vmatpush.msra.mxu2 %v264_v11  ;;  %v204_v59 = vld [vmem:[%s1069_s26 + $0x40] sm:$0xff] }
  0x3e   : > { %858 = vmatpush.msra.mxu3 %v264_v11  ;;  %335 = vmatpush.msra.mxu0 %v264_v11  ;;  %v296_v60 = vld [vmem:[%s1434_s0 + $0x120] sm:$0xff] }
  0x3f   : > { %859 = vmatpush.msra.mxu1 %v263_v12  ;;  %860 = vmatpush.msra.mxu2 %v263_v12  ;;  %v280_v62 = vld [vmem:[%s1434_s0 + $0xa0] sm:$0xff] }
  0x40   : > { %861 = vmatpush.msra.mxu3 %v263_v12  ;;  %336 = vmatpush.msra.mxu0 %v263_v12  ;;  %v240_v63 = vld [vmem:[%s1069_s26 + $0x160] sm:$0xff] }
  0x41   : > { %862 = vmatpush.msra.mxu1 %v262_v13  ;;  %863 = vmatpush.msra.mxu2 %v262_v13  ;;  %v224_v0 = vld [vmem:[%s1069_s26 + $0xe0] sm:$0xff] }
  0x42   : > { %864 = vmatpush.msra.mxu3 %v262_v13  ;;  %337 = vmatpush.msra.mxu0 %v262_v13  ;;  %v312_v2 = vld [vmem:[%s1434_s0 + $0x1a0] sm:$0xff]  ;;  %v309_v13 = vld [vmem:[%s1434_s0 + $0x188] sm:$0xff] }
  0x43   : > { %865 = vmatpush.msra.mxu1 %v261_v14  ;;  %866 = vmatpush.msra.mxu2 %v261_v14  ;;  %v256_v4 = vld [vmem:[%s1069_s26 + $0x1e0] sm:$0xff] }
  0x44   : > { %867 = vmatpush.msra.mxu3 %v261_v14  ;;  %338 = vmatpush.msra.mxu0 %v261_v14  ;;  %v292_v11 = vld [vmem:[%s1434_s0 + $0x100] sm:$0xff] }
  0x45   : > { %868 = vmatpush.msra.mxu1 %v260_v15  ;;  %869 = vmatpush.msra.mxu2 %v260_v15  ;;  %v208_v12 = vld [vmem:[%s1069_s26 + $0x60] sm:$0xff] }
  0x46   : > { %352 = vmatmul.f32.vlgmr.msra.gmra.mxu1 %v212_v16  ;;  %364 = vmatmul.f32.vlgmr.msra.gmra.mxu2 %v228_v17  ;;  %v276_v14 = vld [vmem:[%s1434_s0 + $0x80] sm:$0xff]  ;;  %v198_v16 = vld [vmem:[%s1069_s26 + $0x10] sm:$0xff] }
  0x47   : > { %454 = vmatpush.msrb.mxu2 %v307_v18  ;;  %870 = vmatpush.msra.mxu3 %v260_v15  ;;  %v308_v17 = vld [vmem:[%s1434_s0 + $0x180] sm:$0xff]  ;;  %v199_v18 = vld [vmem:[%s1069_s26 + $0x18] sm:$0xff] }
  0x48   : > { %389 = vmatpush.msrb.mxu1 %v291_v19  ;;  %376 = vmatmul.f32.vlgmr.msra.gmra.mxu3 %v244_v20  ;;  %v201_v19 = vld [vmem:[%s1069_s26 + $0x28] sm:$0xff]  ;;  %v202_v20 = vld [vmem:[%s1069_s26 + $0x30] sm:$0xff] }
  0x49   : > { %455 = vmatpush.msrb.mxu2 %v306_v21  ;;  %519 = vmatpush.msrb.mxu3 %v323_v22  ;;  %v203_v21 = vld [vmem:[%s1069_s26 + $0x38] sm:$0xff]  ;;  %v205_v22 = vld [vmem:[%s1069_s26 + $0x48] sm:$0xff] }
  0x4a   : > { %390 = vmatpush.msrb.mxu1 %v290_v23  ;;  %339 = vmatpush.msra.mxu0 %v260_v15  ;;  %v197_v15 = vld [vmem:[%s1069_s26 + $0x8] sm:$0xff]  ;;  %v206_v23 = vld [vmem:[%s1069_s26 + $0x50] sm:$0xff] }
  0x4b   : > { %456 = vmatpush.msrb.mxu2 %v305_v24  ;;  %520 = vmatpush.msrb.mxu3 %v322_v25  ;;  %v207_v24 = vld [vmem:[%s1069_s26 + $0x58] sm:$0xff]  ;;  %v209_v25 = vld [vmem:[%s1069_s26 + $0x68] sm:$0xff] }
  0x4c   : > { %391 = vmatpush.msrb.mxu1 %v289_v26  ;;  %340 = vmatmul.f32.vlgmr.msra.gmra.mxu0 %v196_v29  ;;  %v210_v26 = vld [vmem:[%s1069_s26 + $0x70] sm:$0xff] }
  0x4d   : > { %457 = vmatpush.msrb.mxu2 %v304_v27  ;;  %521 = vmatpush.msrb.mxu3 %v321_v28  ;;  %v211_v27 = vld [vmem:[%s1069_s26 + $0x78] sm:$0xff]  ;;  %v213_v28 = vld [vmem:[%s1069_s26 + $0x88] sm:$0xff]  ;;  %v214_v29 = vld [vmem:[%s1069_s26 + $0x90] sm:$0xff] }
  0x4e   : > { %392 = vmatpush.msrb.mxu1 %v288_v30  ;;  %367 = vmatmul.f32.gmra.mxu2 %v232_v31  ;;  %v215_v30 = vld [vmem:[%s1069_s26 + $0x98] sm:$0xff]  ;;  %v217_v31 = vld [vmem:[%s1069_s26 + $0xa8] sm:$0xff] }
  0x4f   : > { %355 = vmatmul.f32.gmra.mxu1 %v216_v32  ;;  %458 = vmatpush.msrb.mxu2 %v303_v33  ;;  %v218_v32 = vld [vmem:[%s1069_s26 + $0xb0] sm:$0xff]  ;;  %v219_v33 = vld [vmem:[%s1069_s26 + $0xb8] sm:$0xff] }
  0x50   : > { %522 = vmatpush.msrb.mxu3 %v320_v34  ;;  %393 = vmatpush.msrb.mxu1 %v287_v35  ;;  %v221_v34 = vld [vmem:[%s1069_s26 + $0xc8] sm:$0xff]  ;;  %v222_v35 = vld [vmem:[%s1069_s26 + $0xd0] sm:$0xff] }
  0x51   : > { %379 = vmatmul.f32.gmra.mxu3 %v248_v36  ;;  %459 = vmatpush.msrb.mxu2 %v302_v37  ;;  %v223_v36 = vld [vmem:[%s1069_s26 + $0xd8] sm:$0xff]  ;;  %v225_v37 = vld [vmem:[%s1069_s26 + $0xe8] sm:$0xff] }
  0x52   : > { %523 = vmatpush.msrb.mxu3 %v319_v38  ;;  %394 = vmatpush.msrb.mxu1 %v286_v39  ;;  %v226_v38 = vld [vmem:[%s1069_s26 + $0xf0] sm:$0xff]  ;;  %v227_v39 = vld [vmem:[%s1069_s26 + $0xf8] sm:$0xff] }
  0x53   : > { %460 = vmatpush.msrb.mxu2 %v301_v40  ;;  %v229_v40 = vld [vmem:[%s1069_s26 + $0x108] sm:$0xff] }
  0x54   : > { %524 = vmatpush.msrb.mxu3 %v318_v41  ;;  %395 = vmatpush.msrb.mxu1 %v285_v42  ;;  %v230_v41 = vld [vmem:[%s1069_s26 + $0x110] sm:$0xff]  ;;  %v231_v42 = vld [vmem:[%s1069_s26 + $0x118] sm:$0xff] }
  0x55   : > { %461 = vmatpush.msrb.mxu2 %v300_v43  ;;  %343 = vmatmul.f32.gmra.mxu0 %v200_v44  ;;  %v233_v43 = vld [vmem:[%s1069_s26 + $0x128] sm:$0xff]  ;;  %v234_v44 = vld [vmem:[%s1069_s26 + $0x130] sm:$0xff] }
  0x56   : > { %525 = vmatpush.msrb.mxu3 %v317_v45  ;;  %396 = vmatpush.msrb.mxu1 %v284_v46  ;;  %v235_v45 = vld [vmem:[%s1069_s26 + $0x138] sm:$0xff]  ;;  %v588_v46 = vld [vmem:[%s1435_s1 + $0x20] sm:$0x1] }
  0x57   : > { %358 = vmatmul.f32.gmra.mxu1 %v220_v47  ;;  %370 = vmatmul.f32.gmra.mxu2 %v236_v48  ;;  %v587_v47 = vld [vmem:[%s1435_s1 + $0x18] sm:$0xff]  ;;  %v237_v48 = vld [vmem:[%s1069_s26 + $0x148] sm:$0xff] }
  0x58   : > { %462 = vmatpush.msrb.mxu2 %v299_v49  ;;  %526 = vmatpush.msrb.mxu3 %v316_v50  ;;  %v238_v49 = vld [vmem:[%s1069_s26 + $0x150] sm:$0xff]  ;;  %v239_v50 = vld [vmem:[%s1069_s26 + $0x158] sm:$0xff] }
  0x59   : > { %397 = vmatpush.msrb.mxu1 %v283_v51  ;;  %382 = vmatmul.f32.gmra.mxu3 %v252_v52  ;;  %v241_v51 = vld [vmem:[%s1069_s26 + $0x168] sm:$0xff]  ;;  %v242_v52 = vld [vmem:[%s1069_s26 + $0x170] sm:$0xff] }
  0x5a   : > { %463 = vmatpush.msrb.mxu2 %v298_v53  ;;  %527 = vmatpush.msrb.mxu3 %v315_v54  ;;  %v586_v53 = vld [vmem:[%s1435_s1 + $0x10] sm:$0xff]  ;;  %v243_v54 = vld [vmem:[%s1069_s26 + $0x178] sm:$0xff] }
  0x5b   : > { %398 = vmatpush.msrb.mxu1 %v282_v55  ;;  %802 = vmatpush.msk.msrb.mxu0 %vm638_vm0, %v588_v46  ;;  %v585_v55 = vld [vmem:[%s1435_s1 + $0x8] sm:$0xff] }
  0x5c   : > { %464 = vmatpush.msrb.mxu2 %v297_v56  ;;  %528 = vmatpush.msrb.mxu3 %v314_v57  ;;  %v245_v57 = vld [vmem:[%s1069_s26 + $0x188] sm:$0xff] }
  0x5d   : > { %399 = vmatpush.msrb.mxu1 %v281_v58  ;;  %346 = vmatmul.f32.gmra.mxu0 %v204_v59  ;;  %v246_v58 = vld [vmem:[%s1069_s26 + $0x190] sm:$0xff]  ;;  %v584_v59 = vld [vmem:[%s1435_s1] sm:$0xff] }
  0x5e   : > { %465 = vmatpush.msrb.mxu2 %v296_v60  ;;  %529 = vmatpush.msrb.mxu3 %v313_v61  ;;  %v247_v60 = vld [vmem:[%s1069_s26 + $0x198] sm:$0xff] }
  0x5f   : > { %400 = vmatpush.msrb.mxu1 %v280_v62  ;;  %373 = vmatmul.f32.gmra.mxu2 %v240_v63 }
  0x60   : > { %361 = vmatmul.f32.gmra.mxu1 %v224_v0  ;;  %466 = vmatpush.msrb.mxu2 %v295_v1  ;;  %v249_v0 = vld [vmem:[%s1069_s26 + $0x1a8] sm:$0xff]  ;;  %v250_v1 = vld [vmem:[%s1069_s26 + $0x1b0] sm:$0xff] }
  0x61   : > { %530 = vmatpush.msrb.mxu3 %v312_v2  ;;  %401 = vmatpush.msrb.mxu1 %v279_v3  ;;  %v251_v2 = vld [vmem:[%s1069_s26 + $0x1b8] sm:$0xff] }
  0x62   : > { %385 = vmatmul.f32.gmra.mxu3 %v256_v4  ;;  %467 = vmatpush.msrb.mxu2 %v294_v5 }
  0x63   : > { %531 = vmatpush.msrb.mxu3 %v311_v6  ;;  %402 = vmatpush.msrb.mxu1 %v278_v7  ;;  %v253_v6 = vld [vmem:[%s1069_s26 + $0x1c8] sm:$0xff]  ;;  %v254_v7 = vld [vmem:[%s1069_s26 + $0x1d0] sm:$0xff] }
  0x64   : > { %468 = vmatpush.msrb.mxu2 %v293_v8  ;;  %654 = vmatpush.msrb.mxu0 %v587_v47  ;;  %v255_v8 = vld [vmem:[%s1069_s26 + $0x1d8] sm:$0xff] }
  0x65   : > { %532 = vmatpush.msrb.mxu3 %v310_v9  ;;  %403 = vmatpush.msrb.mxu1 %v277_v10 }
  0x66   : > { %469 = vmatpush.msrb.mxu2 %v292_v11  ;;  %349 = vmatmul.f32.gmra.mxu0 %v208_v12  ;;  %v257_v12 = vld [vmem:[%s1069_s26 + $0x1e8] sm:$0xff] }
  0x67   : > { %533 = vmatpush.msrb.mxu3 %v309_v13  ;;  %404 = vmatpush.msrb.mxu1 %v276_v14  ;;  %v258_v13 = vld [vmem:[%s1069_s26 + $0x1f0] sm:$0xff] }
  0x68   : > { %405 = vmatmul.f32.vlgmr.msrb.gmra.mxu1 %v197_v15  ;;  %470 = vmatmul.f32.vlgmr.msrb.gmra.mxu2 %v198_v16  ;;  %v259_v15 = vld [vmem:[%s1069_s26 + $0x1f8] sm:$0xff]  ;;  %s800_s26 = sshll.u32 %s790_s16, 4 }
  0x69   : > { %534 = vmatpush.msrb.mxu3 %v308_v17  ;;  %655 = vmatpush.msrb.mxu0 %v586_v53  ;;  %p191_p6 = scmp.lt.s32.totalorder %s800_s26, 63 }
  0x6a   : > { %535 = vmatmul.f32.vlgmr.msrb.gmra.mxu3 %v199_v18 }
  0x6b   : > { %656 = vmatpush.msrb.mxu0 %v585_v55  ;;  %s1446_s26 = smov (!%p191_p6, %s800_s26), 63 }
  0x6c   : > { %s801_s24 = sshll.u32 %s1446_s26, 3 }
  0x6d   : > { %657 = vmatpush.msrb.mxu0 %v584_v59  ;;  %s1403_s15 = scalar_lea.vmem %s1437_s3, %s801_s24 }
  0x70   : > { %408 = vmatmul.f32.gmra.mxu1 %v201_v19  ;;  %473 = vmatmul.f32.gmra.mxu2 %v202_v20 }
  0x72   : > { %538 = vmatmul.f32.gmra.mxu3 %v203_v21 }
  0x78   : > { %411 = vmatmul.f32.gmra.mxu1 %v205_v22  ;;  %476 = vmatmul.f32.gmra.mxu2 %v206_v23 }
  0x7a   : > { %541 = vmatmul.f32.gmra.mxu3 %v207_v24 }
  0x80   : > { %414 = vmatmul.f32.gmra.mxu1 %v209_v25  ;;  %479 = vmatmul.f32.gmra.mxu2 %v210_v26 }
  0x82   : > { %544 = vmatmul.f32.gmra.mxu3 %v211_v27 }
  0x88   : > { %417 = vmatmul.f32.gmra.mxu1 %v213_v28  ;;  %482 = vmatmul.f32.gmra.mxu2 %v214_v29 }
  0x8a   : > { %547 = vmatmul.f32.gmra.mxu3 %v215_v30 }
  0x90   : > { %420 = vmatmul.f32.gmra.mxu1 %v217_v31  ;;  %485 = vmatmul.f32.gmra.mxu2 %v218_v32 }
  0x92   : > { %550 = vmatmul.f32.gmra.mxu3 %v219_v33 }
  0x98   : > { %423 = vmatmul.f32.gmra.mxu1 %v221_v34  ;;  %488 = vmatmul.f32.gmra.mxu2 %v222_v35 }
  0x9a   : > { %553 = vmatmul.f32.gmra.mxu3 %v223_v36 }
  0xa0   : > { %426 = vmatmul.f32.gmra.mxu1 %v225_v37  ;;  %491 = vmatmul.f32.gmra.mxu2 %v226_v38 }
  0xa2   : > { %556 = vmatmul.f32.gmra.mxu3 %v227_v39 }
  0xa8   : > { %429 = vmatmul.f32.gmra.mxu1 %v229_v40  ;;  %494 = vmatmul.f32.gmra.mxu2 %v230_v41 }
  0xaa   : > { %559 = vmatmul.f32.gmra.mxu3 %v231_v42 }
  0xb0   : > { %432 = vmatmul.f32.gmra.mxu1 %v233_v43  ;;  %497 = vmatmul.f32.gmra.mxu2 %v234_v44 }
  0xb2   : > { %562 = vmatmul.f32.gmra.mxu3 %v235_v45 }
  0xb8   : > { %435 = vmatmul.f32.gmra.mxu1 %v237_v48  ;;  %500 = vmatmul.f32.gmra.mxu2 %v238_v49 }
  0xba   : > { %565 = vmatmul.f32.gmra.mxu3 %v239_v50 }
  0xc0   : > { %438 = vmatmul.f32.gmra.mxu1 %v241_v51  ;;  %503 = vmatmul.f32.gmra.mxu2 %v242_v52 }
  0xc2   : > { %568 = vmatmul.f32.gmra.mxu3 %v243_v54 }
  0xc3   : > { %v1331_v56 = vpop.f32.mrf.mxu1 }
  0xc8   : > { %441 = vmatmul.f32.gmra.mxu1 %v245_v57  ;;  %506 = vmatmul.f32.gmra.mxu2 %v246_v58 }
  0xc9   : > { %v1339_v61 = vpop.f32.mrf.mxu2  ;;  %v341_v14 = vpop.f32.mrf.mxu0 }
  0xca   : > { %571 = vmatmul.f32.gmra.mxu3 %v247_v60 }
  0xcb   : > { %v1341_v62 = vpop.f32.mrf.mxu3 }
  0xcc   : > { %v1343_v63 = vpop.f32.mrf.mxu1 }
  0xd0   : > { %444 = vmatmul.f32.gmra.mxu1 %v249_v0  ;;  %509 = vmatmul.f32.gmra.mxu2 %v250_v1 }
  0xd1   : > { %v1348_v3 = vpop.f32.mrf.mxu2 }
  0xd2   : > { %574 = vmatmul.f32.gmra.mxu3 %v251_v2  ;;  %v344_v20 = vpop.f32.mrf.mxu0 }
  0xd4   : > { %v1350_v4 = vpop.f32.mrf.mxu1  ;;  %v1352_v5 = vpop.f32.mrf.mxu3 }
  0xd8   : > { %447 = vmatmul.f32.gmra.mxu1 %v253_v6  ;;  %512 = vmatmul.f32.gmra.mxu2 %v254_v7 }
  0xda   : > { %577 = vmatmul.f32.gmra.mxu3 %v255_v8  ;;  %v1357_v9 = vpop.f32.mrf.mxu2  ;;  %v347_v27 = vpop.f32.mrf.mxu0 }
  0xdc   : > { %v1359_v10 = vpop.f32.mrf.mxu3 }
  0xdd   : > { %v1361_v11 = vpop.f32.mrf.mxu1 }
  0xe0   : > { %450 = vmatmul.f32.gmra.mxu1 %v257_v12  ;;  %515 = vmatmul.f32.gmra.mxu2 %v258_v13 }
  0xe2   : > { %580 = vmatmul.f32.gmra.mxu3 %v259_v15  ;;  %v1366_v16 = vpop.f32.mrf.mxu2 }
  0xe3   : > { %v350_v36 = vpop.f32.mrf.mxu0 }
  0xe5   : > { %v1368_v17 = vpop.f32.mrf.mxu3  ;;  %v406_v18 = vpop.f32.mrf.mxu1 }
  0xe6   : > { %v407_v19 = vadd.f32 %v406_v18, %v341_v14 }
  0xeb   : > { %v471_v21 = vpop.f32.mrf.mxu2 }
  0xec   : > { %v472_v22 = vadd.f32 %v471_v21, %v407_v19 }
  0xed   : > { %v409_v23 = vpop.f32.mrf.mxu1  ;;  %v536_v24 = vpop.f32.mrf.mxu3 }
  0xee   : > { %v537_v25 = vadd.f32 %v536_v24, %v472_v22  ;;  %v410_v26 = vadd.f32 %v409_v23, %v344_v20 }
  0xf0   : > { %803 = vmatmul.msk.f32.vlgmr.msrb.gmra.mxu0 %vm589_vm1, %v537_v25 }
  0xf3   : > { %v474_v28 = vpop.f32.mrf.mxu2 }
  0xf4   : > { %v475_v29 = vadd.f32 %v474_v28, %v410_v26 }
  0xf5   : > { %v412_v30 = vpop.f32.mrf.mxu1  ;;  %v539_v31 = vpop.f32.mrf.mxu3 }
  0xf6   : > { %v540_v32 = vadd.f32 %v539_v31, %v475_v29  ;;  %v413_v33 = vadd.f32 %v412_v30, %v347_v27 }
  0xf8   : > { %804 = vmatmul.msk.f32.gmra.mxu0 %vm589_vm1, %v540_v32 }
  0xfb   : > { %v477_v34 = vpop.f32.mrf.mxu2 }
  0xfc   : > { %v478_v35 = vadd.f32 %v477_v34, %v413_v33 }
  0xfd   : > { %v415_v37 = vpop.f32.mrf.mxu1  ;;  %v542_v38 = vpop.f32.mrf.mxu3 }
  0xfe   : > { %v543_v39 = vadd.f32 %v542_v38, %v478_v35  ;;  %v416_v40 = vadd.f32 %v415_v37, %v350_v36 }
 0x100   : > { %805 = vmatmul.msk.f32.gmra.mxu0 %vm589_vm1, %v543_v39 }
 0x103   : > { %v480_v41 = vpop.f32.mrf.mxu2 }
 0x104   : > { %v481_v42 = vadd.f32 %v480_v41, %v416_v40 }
 0x105   : > { %v418_v43 = vpop.f32.mrf.mxu1  ;;  %v545_v44 = vpop.f32.mrf.mxu3 }
 0x106   : > { %v546_v45 = vadd.f32 %v545_v44, %v481_v42  ;;  %v419_v46 = vadd.f32 %v418_v43, %v1331_v56 }
 0x108   : > { %806 = vmatmul.msk.f32.gmra.mxu0 %vm589_vm1, %v546_v45 }
 0x10b   : > { %v483_v47 = vpop.f32.mrf.mxu2 }
 0x10c   : > { %v484_v48 = vadd.f32 %v483_v47, %v419_v46 }
 0x10d   : > { %v421_v49 = vpop.f32.mrf.mxu1  ;;  %v548_v50 = vpop.f32.mrf.mxu3 }
 0x10e   : > { %v549_v51 = vadd.f32 %v548_v50, %v484_v48  ;;  %v422_v52 = vadd.f32 %v421_v49, %v1343_v63 }
 0x110   : > { %807 = vmatmul.msk.f32.gmra.mxu0 %vm589_vm1, %v549_v51 }
 0x113   : > { %v486_v53 = vpop.f32.mrf.mxu2 }
 0x114   : > { %v487_v54 = vadd.f32 %v486_v53, %v422_v52 }
 0x115   : > { %v424_v55 = vpop.f32.mrf.mxu1  ;;  %v551_v57 = vpop.f32.mrf.mxu3 }
 0x116   : > { %v552_v58 = vadd.f32 %v551_v57, %v487_v54  ;;  %v425_v59 = vadd.f32 %v424_v55, %v1350_v4 }
 0x118   : > { %808 = vmatmul.msk.f32.gmra.mxu0 %vm589_vm1, %v552_v58 }
 0x11b   : > { %v489_v60 = vpop.f32.mrf.mxu2 }
 0x11c   : > { %v490_v56 = vadd.f32 %v489_v60, %v425_v59 }
 0x11d   : > { %v427_v0 = vpop.f32.mrf.mxu1  ;;  %v554_v1 = vpop.f32.mrf.mxu3 }
 0x11e   : > { %v555_v2 = vadd.f32 %v554_v1, %v490_v56  ;;  %v428_v6 = vadd.f32 %v427_v0, %v1361_v11 }
 0x120   : > { %809 = vmatmul.msk.f32.gmra.mxu0 %vm589_vm1, %v555_v2 }
 0x123   : > { %v492_v7 = vpop.f32.mrf.mxu2 }
 0x124   : > { %v493_v63 = vadd.f32 %v492_v7, %v428_v6 }
 0x125   : > { %v430_v8 = vpop.f32.mrf.mxu1  ;;  %v557_v12 = vpop.f32.mrf.mxu3 }
 0x126   : > { %v558_v13 = vadd.f32 %v557_v12, %v493_v63  ;;  %v431_v14 = vadd.f32 %v430_v8, %v1339_v61 }
 0x128   : > { %810 = vmatmul.msk.f32.gmra.mxu0 %vm589_vm1, %v558_v13 }
 0x12b   : > { %v495_v15 = vpop.f32.mrf.mxu2 }
 0x12c   : > { %v496_v4 = vadd.f32 %v495_v15, %v431_v14 }
 0x12d   : > { %v433_v18 = vpop.f32.mrf.mxu1  ;;  %v560_v19 = vpop.f32.mrf.mxu3 }
 0x12e   : > { %v561_v20 = vadd.f32 %v560_v19, %v496_v4  ;;  %v434_v21 = vadd.f32 %v433_v18, %v1348_v3 }
 0x130   : > { %811 = vmatmul.msk.f32.gmra.mxu0 %vm589_vm1, %v561_v20 }
 0x133   : > { %v498_v22 = vpop.f32.mrf.mxu2 }
 0x134   : > { %v499_v11 = vadd.f32 %v498_v22, %v434_v21 }
 0x135   : > { %v436_v23 = vpop.f32.mrf.mxu1  ;;  %v563_v24 = vpop.f32.mrf.mxu3 }
 0x136   : > { %v564_v25 = vadd.f32 %v563_v24, %v499_v11  ;;  %v437_v26 = vadd.f32 %v436_v23, %v1357_v9 }
 0x138   : > { %812 = vmatmul.msk.f32.gmra.mxu0 %vm589_vm1, %v564_v25 }
 0x13b   : > { %v501_v27 = vpop.f32.mrf.mxu2 }
 0x13c   : > { %v502_v61 = vadd.f32 %v501_v27, %v437_v26 }
 0x13d   : > { %v439_v28 = vpop.f32.mrf.mxu1  ;;  %v566_v29 = vpop.f32.mrf.mxu3 }
 0x13e   : > { %v567_v30 = vadd.f32 %v566_v29, %v502_v61  ;;  %v440_v31 = vadd.f32 %v439_v28, %v1366_v16 }
 0x140   : > { %813 = vmatmul.msk.f32.gmra.mxu0 %vm589_vm1, %v567_v30 }
 0x143   : > { %v504_v32 = vpop.f32.mrf.mxu2 }
 0x144   : > { %v505_v3 = vadd.f32 %v504_v32, %v440_v31 }
 0x145   : > { %v442_v33 = vpop.f32.mrf.mxu1  ;;  %v569_v34 = vpop.f32.mrf.mxu3 }
 0x146   : > { %v570_v35 = vadd.f32 %v569_v34, %v505_v3  ;;  %v443_v36 = vadd.f32 %v442_v33, %v1341_v62 }
 0x148   : > { %814 = vmatmul.msk.f32.gmra.mxu0 %vm589_vm1, %v570_v35 }
 0x14b   : > { %v507_v37 = vpop.f32.mrf.mxu2 }
 0x14c   : > { %v508_v9 = vadd.f32 %v507_v37, %v443_v36 }
 0x14d   : > { %v445_v38 = vpop.f32.mrf.mxu1  ;;  %v572_v39 = vpop.f32.mrf.mxu3 }
 0x14e   : > { %v573_v40 = vadd.f32 %v572_v39, %v508_v9  ;;  %v446_v41 = vadd.f32 %v445_v38, %v1352_v5 }
 0x150   : > { %815 = vmatmul.msk.f32.gmra.mxu0 %vm589_vm1, %v573_v40 }
 0x153   : > { %v510_v16 = vpop.f32.mrf.mxu2 }
 0x154   : > { %v511_v42 = vadd.f32 %v510_v16, %v446_v41 }
 0x155   : > { %v448_v43 = vpop.f32.mrf.mxu1  ;;  %v575_v44 = vpop.f32.mrf.mxu3 }
 0x156   : > { %v576_v45 = vadd.f32 %v575_v44, %v511_v42  ;;  %v449_v46 = vadd.f32 %v448_v43, %v1359_v10 }
 0x158   : > { %816 = vmatmul.msk.f32.gmra.mxu0 %vm589_vm1, %v576_v45 }
 0x15b   : > { %v513_v62 = vpop.f32.mrf.mxu2 }
 0x15c   : > { %v514_v47 = vadd.f32 %v513_v62, %v449_v46 }
 0x15d   : > { %v578_v48 = vpop.f32.mrf.mxu3  ;;  %v451_v50 = vpop.f32.mrf.mxu1 }
 0x15e   : > { %v579_v49 = vadd.f32 %v578_v48, %v514_v47  ;;  %v452_v5 = vadd.f32 %v451_v50, %v1368_v17 }
 0x160   : > { %817 = vmatmul.msk.f32.gmra.mxu0 %vm589_vm1, %v579_v49 }
 0x163   : > { %v516_v51 = vpop.f32.mrf.mxu2 }
 0x164   : > { %v517_v52 = vadd.f32 %v516_v51, %v452_v5 }
 0x165   : > { %v581_v53 = vpop.f32.mrf.mxu3 }
 0x166   : > { %v582_v54 = vadd.f32 %v581_v53, %v517_v52 }
 0x168   : > { %818 = vmatmul.msk.f32.gmra.mxu0 %vm589_vm1, %v582_v54 }
 0x16d   : > { %v659_v10 = vpop.f32.mrf.mxu0 }
 0x16e   : > { %707 = vst [vmem:[%s1403_s15] sm:$0xff] %v659_v10 }
 0x175   : > { %v662_v17 = vpop.f32.mrf.mxu0 }
 0x176   : > { %708 = vst [vmem:[%s1403_s15 + $0x8] sm:$0xff] %v662_v17 }
 0x17d   : > { %v665_v55 = vpop.f32.mrf.mxu0 }
 0x17e   : > { %709 = vst [vmem:[%s1403_s15 + $0x10] sm:$0xff] %v665_v55 }
 0x185   : > { %v668_v57 = vpop.f32.mrf.mxu0 }
 0x186   : > { %710 = vst [vmem:[%s1403_s15 + $0x18] sm:$0xff] %v668_v57 }
 0x18d   : > { %v671_v58 = vpop.f32.mrf.mxu0 }
 0x18e   : > { %711 = vst [vmem:[%s1403_s15 + $0x20] sm:$0xff] %v671_v58 }
 0x195   : > { %v674_v59 = vpop.f32.mrf.mxu0 }
 0x196   : > { %712 = vst [vmem:[%s1403_s15 + $0x28] sm:$0xff] %v674_v59 }
 0x19d   : > { %v677_v60 = vpop.f32.mrf.mxu0 }
 0x19e   : > { %713 = vst [vmem:[%s1403_s15 + $0x30] sm:$0xff] %v677_v60 }
 0x1a5   : > { %v680_v56 = vpop.f32.mrf.mxu0 }
 0x1a6   : > { %714 = vst [vmem:[%s1403_s15 + $0x38] sm:$0xff] %v680_v56 }
 0x1ad   : > { %v683_v0 = vpop.f32.mrf.mxu0 }
 0x1ae   : > { %715 = vst [vmem:[%s1403_s15 + $0x40] sm:$0xff] %v683_v0 }
 0x1b5   : > { %v686_v1 = vpop.f32.mrf.mxu0 }
 0x1b6   : > { %716 = vst [vmem:[%s1403_s15 + $0x48] sm:$0xff] %v686_v1 }
 0x1bd   : > { %v689_v2 = vpop.f32.mrf.mxu0 }
 0x1be   : > { %717 = vst [vmem:[%s1403_s15 + $0x50] sm:$0xff] %v689_v2 }
 0x1c5   : > { %v692_v6 = vpop.f32.mrf.mxu0 }
 0x1c6   : > { %718 = vst [vmem:[%s1403_s15 + $0x58] sm:$0xff] %v692_v6 }
 0x1cd   : > { %v695_v7 = vpop.f32.mrf.mxu0 }
 0x1ce   : > { %719 = vst [vmem:[%s1403_s15 + $0x60] sm:$0xff] %v695_v7 }
 0x1d5   : > { %v698_v63 = vpop.f32.mrf.mxu0 }
 0x1d6   : > { %720 = vst [vmem:[%s1403_s15 + $0x68] sm:$0xff] %v698_v63 }
 0x1dd   : > { %v701_v8 = vpop.f32.mrf.mxu0 }
 0x1de   : > { %721 = vst [vmem:[%s1403_s15 + $0x70] sm:$0xff] %v701_v8 }
 0x1e5   : > { %v704_v12 = vpop.f32.mrf.mxu0 }
 0x1e6   : > { %722 = vst [vmem:[%s1403_s15 + $0x78] sm:$0xff] %v704_v12 }
 0x1e7 PF: > { %p13_p7 = scmp.ge.s32.totalorder %s1020_s17, 6   ;;  %s1441_s12 = smov %s968_s13 }
 0x1e8   : > { %s1442_s13 = smov %s972_s14  ;;  %s1443_s14 = smov %s1030_s20 }
 0x1e9   : > { %s1444_s15 = smov %s1020_s17  ;;  %15 = sbr.rel (!%p13_p7) target bundleno = 3 (0x3), region = 72 }
 0x1ee   :  { %745 = vsyncpa [#allocation3], 1 }
 0x1ef   :  { %747 = vsyncpa [#allocation3 + $0x1], 1 }

</bundles_post_ra>
